<compile_context>
chip_gen: v5e
topology: v5e:2x2
jax: 0.10.0
libtpu: 0.0.40
codegen_flags: <defaults>
</compile_context>

<pallas_src>
import jax
import jax.numpy as jnp
from jax import lax
from jax.experimental import pallas as pl
from jax.experimental.pallas import tpu as pltpu

LANES = 128  # lane width / padded hidden width / packed-output width


def _round_up(x, m):
    return ((x + m - 1) // m) * m


def pack_params(w1, b1, wa, ba, wc, bc):
    """Pack all AC parameters into one lane-dense (rows, 128) f32 buffer.

    Row layout (all section starts are multiples of 8):
      [0, S)                 : W1          (true cols [0, H))
      [S_pad, S_pad+1)       : b1          (row 0 of an 8-row block)
      [S_pad+8, S_pad+8+128) : fused head  (rows [0,H) used; cols: [0,A)=Wa, A=Wc)
      [S_pad+136, +1)        : fused bias  (cols: [0,A)=ba, A=bc)
    """
    S, H = w1.shape
    A = wa.shape[1]
    assert H <= LANES and (A + 1) <= LANES, "packing assumes H<=128 and A+1<=128"
    s_pad = _round_up(S, 8)
    r_b1 = s_pad
    r_wh = s_pad + 8
    r_bh = r_wh + LANES
    n_rows = r_bh + 8

    p = jnp.zeros((n_rows, LANES), jnp.float32)
    p = p.at[:S, :H].set(w1)
    p = p.at[r_b1, :H].set(b1.reshape(H))
    p = p.at[r_wh:r_wh + H, :A].set(wa)
    p = p.at[r_wh:r_wh + H, A].set(wc.reshape(H))
    p = p.at[r_bh, :A].set(ba.reshape(A))
    p = p.at[r_bh, A].set(bc.reshape(()))
    return p


def _make_ac_kernel(state_dim, action_dim, s_pad):
    r_b1 = s_pad
    r_wh = s_pad + 8
    r_bh = r_wh + LANES

    def kernel(state_ref, params_ref, out_ref):
        # Static, sublane-aligned views into the packed parameter buffer.
        w1 = params_ref[0:state_dim, :]            # (S, 128); cols >= H are 0
        b1 = params_ref[r_b1:r_b1 + 1, :]          # (1, 128)
        wh = params_ref[r_wh:r_wh + LANES, :]      # (128, 128); rows >= H are 0
        bh = params_ref[r_bh:r_bh + 1, :]          # (1, 128)

        # Hidden layer: x = relu(state @ W1 + b1).  Padded lanes are exactly 0.
        x = jnp.dot(state_ref[...], w1, preferred_element_type=jnp.float32) + b1
        x = jnp.maximum(x, 0.0)                    # (Bt, 128)

        # Fused actor+critic head in a single MXU pass.
        y = jnp.dot(x, wh, preferred_element_type=jnp.float32) + bh  # (Bt, 128)

        col = lax.broadcasted_iota(jnp.int32, y.shape, 1)
        is_logit = col < action_dim

        # Masked softmax over the first A lanes.
        logits = jnp.where(is_logit, y, jnp.float32(-1e30))
        m = jnp.max(logits, axis=-1, keepdims=True)
        e = jnp.where(is_logit, jnp.exp(logits - m), 0.0)
        denom = jnp.sum(e, axis=-1, keepdims=True)
        r = pl.reciprocal(denom, approx=True)      # EUP vrcp (free slot)
        r = r * (2.0 - denom * r)                  # one Newton step -> ~f32 exact
        policy = e * r

        # Lane-dense packed output: policy in lanes [0,A), value in lane A,
        # zeros elsewhere (policy is exactly 0 at lanes > A).
        out_ref[...] = jnp.where(col == action_dim, y, policy).astype(out_ref.dtype)

    return kernel


def _choose_block_b(batch, requested):
    """Pick an 8-aligned batch tile.

    Large default (amortizes the ~0.35 us/step pipeline overhead), capped so
    the grid has >= 2 steps whenever the batch allows it (v7x has 2 TCs and
    only shards "parallel" grid axes with >= 2 iterations; the cap costs one
    extra serial step on single-TC v5e/v6e, which is negligible).
    """
    bb = min(int(requested), _round_up(batch, 8))
    if batch >= 16:
        bb = min(bb, _round_up(pl.cdiv(batch, 2), 8))
    return max(8, _round_up(bb, 8))


def ac_forward(state, packed_params, action_dim, *, block_b=2048,
               return_packed=False):
    batch, state_dim = state.shape
    bb = _choose_block_b(batch, block_b)
    grid_b = pl.cdiv(batch, bb)
    batch_pad = grid_b * bb
    if batch_pad != batch:
        # cdiv grid + zero-padded last tile: a non-divisible batch never
        # collapses into one giant (VMEM-blowing) block.
        state = jnp.pad(state, ((0, batch_pad - batch), (0, 0)))

    s_pad = _round_up(state_dim, 8)
    n_rows = packed_params.shape[0]
    kernel = _make_ac_kernel(state_dim, action_dim, s_pad)

    out = pl.pallas_call(
        kernel,
        out_shape=jax.ShapeDtypeStruct((batch_pad, LANES), jnp.float32),
        grid=(grid_b,),
        in_specs=[
            pl.BlockSpec((bb, state_dim), lambda i: (i, 0)),
            # Constant block index across the grid -> Pallas detects the
            # unchanged block and skips re-fetching the ~90 KB param buffer.
            pl.BlockSpec((n_rows, LANES), lambda i: (0, 0)),
        ],
        out_specs=pl.BlockSpec((bb, LANES), lambda i: (i, 0)),
        compiler_params=pltpu.CompilerParams(
            dimension_semantics=("parallel",),     # shards batch tiles on v7x
            # ~8 MB live at block_b=2048; 32 MiB gives headroom for larger
            # caller-chosen tiles, clears v5e's 16 MiB default scoped limit,
            # and stays well under v7x's 64 MiB physical VMEM.
            vmem_limit_bytes=32 * 1024 * 1024,
        ),
    )(state, packed_params)

    if return_packed:
        # Performance path: no wrapper-side slab re-reads. Layout:
        # lanes [0, A) = policy, lane A = value, lanes > A = 0.
        return out if batch_pad == batch else out[:batch]

    policy = out[:batch, :action_dim]
    value = out[:batch, action_dim:action_dim + 1]
    return policy, value


def init_params(key, state_dim, action_dim, hidden_dim):
    k1, k2, k3, k4, k5, k6 = jax.random.split(key, 6)

    def lin(kw, kb, fan_in, fan_out):
        bound = 1.0 / (fan_in ** 0.5)
        w = jax.random.uniform(kw, (fan_in, fan_out), jnp.float32, -bound, bound)
        b = jax.random.uniform(kb, (1, fan_out), jnp.float32, -bound, bound)
        return w, b

    w1, b1 = lin(k1, k2, state_dim, hidden_dim)
    wa, ba = lin(k3, k4, hidden_dim, action_dim)
    wc, bc = lin(k5, k6, hidden_dim, 1)
    return w1, b1, wa, ba, wc, bc


def _reference(state, w1, b1, wa, ba, wc, bc):
    x = jnp.maximum(state @ w1 + b1, 0.0)
    policy = jax.nn.softmax(x @ wa + ba, axis=-1)
    value = x @ wc + bc
    return policy, value


if __name__ == "__main__":
    state_dim, action_dim, hidden_dim = 32, 8, 64

    key = jax.random.PRNGKey(0)
    k_state, k_params, k_big, k_odd = jax.random.split(key, 4)

    w1, b1, wa, ba, wc, bc = init_params(k_params, state_dim, action_dim,
                                         hidden_dim)
    params = pack_params(w1, b1, wa, ba, wc, bc)

    # --- small batch (single padded block) ---
    batch = 4
    state = jax.random.normal(k_state, (batch, state_dim), jnp.float32)
    policy, value = ac_forward(state, params, action_dim)
    jax.block_until_ready((policy, value))

    policy_ref, value_ref = _reference(state, w1, b1, wa, ba, wc, bc)
    assert policy.shape == (batch, action_dim) and value.shape == (batch, 1)
    assert jnp.allclose(policy, policy_ref, atol=1e-5)
    assert jnp.allclose(value, value_ref, atol=1e-5)
    assert jnp.allclose(jnp.sum(policy, axis=-1), 1.0, atol=1e-5)

    # --- divisible batch: exercises the >=2-step parallel batch-tile grid ---
    batch_big = 256
    state_big = jax.random.normal(k_big, (batch_big, state_dim), jnp.float32)
    policy_b, value_b = ac_forward(state_big, params, action_dim)
    jax.block_until_ready((policy_b, value_b))
    policy_br, value_br = _reference(state_big, w1, b1, wa, ba, wc, bc)
    assert jnp.allclose(policy_b, policy_br, atol=1e-5)
    assert jnp.allclose(value_b, value_br, atol=1e-5)

    # --- packed output path (no wrapper-side slab re-reads) ---
    packed_out = ac_forward(state_big, params, action_dim, return_packed=True)
    jax.block_until_ready(packed_out)
    assert jnp.allclose(packed_out[:, :action_dim], policy_br, atol=1e-5)
    assert jnp.allclose(packed_out[:, action_dim:action_dim + 1], value_br,
                        atol=1e-5)

    # --- non-divisible batch: exercises cdiv grid + zero-padded last tile ---
    batch_odd = 300
    state_odd = jax.random.normal(k_odd, (batch_odd, state_dim), jnp.float32)
    policy_o, value_o = ac_forward(state_odd, params, action_dim)
    jax.block_until_ready((policy_o, value_o))
    policy_or, value_or = _reference(state_odd, w1, b1, wa, ba, wc, bc)
    assert policy_o.shape == (batch_odd, action_dim)
    assert value_o.shape == (batch_odd, 1)
    assert jnp.allclose(policy_o, policy_or, atol=1e-5)
    assert jnp.allclose(value_o, value_or, atol=1e-5)

    print("KERNEL_OK")
</pallas_src>

<mosaic_0001>
module attributes {stable_mosaic.version = 11 : i64} {
  func.func @kernel(%arg0: i32, %arg1: memref<8x32xf32, #tpu.memory_space<vmem>>, %arg2: memref<176x128xf32, #tpu.memory_space<vmem>>, %arg3: memref<8x128xf32, #tpu.memory_space<vmem>>) attributes {dimension_semantics = [#tpu.dimension_semantics<parallel>], iteration_bounds = array<i64: 1>, scalar_prefetch = 0 : i64, scratch_operands = 0 : i64, tpu.core_type = #tpu.core_type<tc>, window_params = [{transform_indices = @transform_0, window_bounds = array<i64: 8, 32>}, {pipeline_mode = #tpu.pipeline_mode<synchronous>, transform_indices = @transform_1, window_bounds = array<i64: 176, 128>}, {transform_indices = @transform_2, window_bounds = array<i64: 8, 128>}]} {
    %c0 = arith.constant 0 : index
    %c0_0 = arith.constant 0 : index
    %0 = vector.load %arg2[%c0, %c0_0] : memref<176x128xf32, #tpu.memory_space<vmem>>, vector<32x128xf32>
    %c32 = arith.constant 32 : index
    %c0_1 = arith.constant 0 : index
    %1 = vector.load %arg2[%c32, %c0_1] : memref<176x128xf32, #tpu.memory_space<vmem>>, vector<1x128xf32>
    %c40 = arith.constant 40 : index
    %c0_2 = arith.constant 0 : index
    %2 = vector.load %arg2[%c40, %c0_2] : memref<176x128xf32, #tpu.memory_space<vmem>>, vector<128x128xf32>
    %c168 = arith.constant 168 : index
    %c0_3 = arith.constant 0 : index
    %3 = vector.load %arg2[%c168, %c0_3] : memref<176x128xf32, #tpu.memory_space<vmem>>, vector<1x128xf32>
    %c0_4 = arith.constant 0 : index
    %c0_5 = arith.constant 0 : index
    %4 = vector.load %arg1[%c0_4, %c0_5] : memref<8x32xf32, #tpu.memory_space<vmem>>, vector<8x32xf32>
    %cst = arith.constant dense<0.000000e+00> : vector<8x128xf32>
    %5 = tpu.matmul %4, %0, %cst {dimension_numbers = #tpu.dot_dimension_numbers<[1], [0], [0], [1], [0, 0, 1, 1], [], []>} : vector<8x32xf32>, vector<32x128xf32>, vector<8x128xf32> -> vector<8x128xf32>
    %6 = vector.broadcast %1 : vector<1x128xf32> to vector<8x128xf32>
    %7 = arith.addf %5, %6 : vector<8x128xf32>
    %cst_6 = arith.constant 0.000000e+00 : f32
    %8 = vector.broadcast %cst_6 : f32 to vector<8x128xf32>
    %9 = arith.maximumf %7, %8 : vector<8x128xf32>
    %cst_7 = arith.constant dense<0.000000e+00> : vector<8x128xf32>
    %10 = tpu.matmul %9, %2, %cst_7 {dimension_numbers = #tpu.dot_dimension_numbers<[1], [0], [0], [1], [0, 0, 1, 1], [], []>} : vector<8x128xf32>, vector<128x128xf32>, vector<8x128xf32> -> vector<8x128xf32>
    %11 = vector.broadcast %3 : vector<1x128xf32> to vector<8x128xf32>
    %12 = arith.addf %10, %11 : vector<8x128xf32>
    %13 = tpu.iota {dimensions = array<i32: 1>} : vector<8x128xi32>
    %c8_i32 = arith.constant 8 : i32
    %14 = vector.broadcast %c8_i32 : i32 to vector<8x128xi32>
    %15 = arith.cmpi slt, %13, %14 : vector<8x128xi32>
    %cst_8 = arith.constant -1.000000e+30 : f32
    %16 = vector.broadcast %cst_8 : f32 to vector<8x128xf32>
    %17 = arith.select %15, %12, %16 : vector<8x128xi1>, vector<8x128xf32>
    %cst_9 = arith.constant dense<0xFF800000> : vector<8xf32>
    %18 = vector.multi_reduction <maximumf>, %17, %cst_9 [1] : vector<8x128xf32> to vector<8xf32>
    %19 = vector.shape_cast %18 : vector<8xf32> to vector<8x1xf32>
    %20 = vector.broadcast %19 : vector<8x1xf32> to vector<8x128xf32>
    %21 = arith.subf %17, %20 : vector<8x128xf32>
    %22 = math.exp %21 : vector<8x128xf32>
    %cst_10 = arith.constant 0.000000e+00 : f32
    %23 = vector.broadcast %cst_10 : f32 to vector<8x128xf32>
    %24 = arith.select %15, %22, %23 : vector<8x128xi1>, vector<8x128xf32>
    %cst_11 = arith.constant dense<0.000000e+00> : vector<8xf32>
    %25 = vector.multi_reduction <add>, %24, %cst_11 [1] : vector<8x128xf32> to vector<8xf32>
    %26 = vector.shape_cast %25 : vector<8xf32> to vector<8x1xf32>
    %27 = tpu.reciprocal %26 {approx = true} : vector<8x1xf32> -> vector<8x1xf32>
    %28 = arith.mulf %26, %27 : vector<8x1xf32>
    %cst_12 = arith.constant 2.000000e+00 : f32
    %29 = vector.broadcast %cst_12 : f32 to vector<8x1xf32>
    %30 = arith.subf %29, %28 : vector<8x1xf32>
    %31 = arith.mulf %27, %30 : vector<8x1xf32>
    %32 = vector.broadcast %31 : vector<8x1xf32> to vector<8x128xf32>
    %33 = arith.mulf %24, %32 : vector<8x128xf32>
    %c8_i32_13 = arith.constant 8 : i32
    %34 = vector.broadcast %c8_i32_13 : i32 to vector<8x128xi32>
    %35 = arith.cmpi eq, %13, %34 : vector<8x128xi32>
    %36 = arith.select %35, %12, %33 : vector<8x128xi1>, vector<8x128xf32>
    %c0_14 = arith.constant 0 : index
    %c0_15 = arith.constant 0 : index
    %37 = vector.load %arg3[%c0_14, %c0_15] : memref<8x128xf32, #tpu.memory_space<vmem>>, vector<8x128xf32>
    tpu.vector_store %arg3[%c0_14, %c0_15], %36 {strides = array<i32>} : memref<8x128xf32, #tpu.memory_space<vmem>>, vector<8x128xf32>,
    return
  }
  func.func @transform_0(%arg0: i32) -> (i32, i32) {
    %c0_i32 = arith.constant 0 : i32
    %c0_i32_0 = arith.constant 0 : i32
    return %arg0, %c0_i32 : i32, i32
  }
  func.func @transform_1(%arg0: i32) -> (i32, i32) {
    %c0_i32 = arith.constant 0 : i32
    %c0_i32_0 = arith.constant 0 : i32
    %c0_i32_1 = arith.constant 0 : i32
    return %c0_i32, %c0_i32_0 : i32, i32
  }
  func.func @transform_2(%arg0: i32) -> (i32, i32) {
    %c0_i32 = arith.constant 0 : i32
    %c0_i32_0 = arith.constant 0 : i32
    return %arg0, %c0_i32 : i32, i32
  }
}

</mosaic_0001>

<bundles_post_ra>
// kernel: tpu_custom_call.1
= control target key start
LH: loop header
LB: loop body
LE: loop exit
PB: predicated region body
PF: predicated region fallthrough
CT: control target
= control target key end

     0   :  { %7 = vsyncpa [#allocation3], 0  ;;  %s269_s0 = inlined_call_operand.hbm [shape: f32[8,32], index: 0, kind: input, shape index: {}]   ;;  %s270_s1 = inlined_call_operand.hbm [shape: f32[176,128], index: 1, kind: input, shape index: {}]   ;;  %s271_s2 = inlined_call_operand.hbm [shape: f32[8,128], index: 2, kind: output, shape index: {}]  }
   0x1   :  { %8 = vsyncpa [#allocation6], 0 }
   0x2   :  { %9 = vsyncpa [#allocation4], 0  ;;  %s15_s11 = sshll.u32 %s269_s0, 4  ;;  %s240_s12 = smov [#allocation2]   ;;  %s16_s11 = int_to_ptr.hbm [resolvable:$true] %s15_s11 }
   0x3   :  { %s17_s13 = sshll.u32 %s240_s12, 4  ;;  %s25_s16 = sshll.u32 %s270_s1, 4  ;;  %s18_s13 = int_to_ptr.vmem [resolvable:$true] %s17_s13  ;;  %s26_s16 = int_to_ptr.hbm [resolvable:$true] %s25_s16 }
   0x4   :  { %20 = dma.hbm_to_vmem [thread:$0]  %s16_s11, 128, %s18_s13, [#allocation3]  }
   0x5   :  { %s241_s17 = smov [#allocation5]   ;;  %s242_s19 = smov 128  }
   0x6   :  { %s27_s18 = sshll.u32 %s241_s17, 4  ;;  %s243_s20 = smov 8   ;;  %s28_s18 = int_to_ptr.vmem [resolvable:$true] %s27_s18 }
   0x7   :  { %33 = dma.hbm_to_vmem [thread:$0]  %s26_s16, 2816, %s28_s18, [#allocation6], %s242_s19, %s242_s19, %s243_s20  }
   0x8   :  { %234 = dma.done.wait [#allocation3], 128  }
   0x9   :  { %235 = vsyncadd [#allocation3], 4294967168 }
   0xa   :  { %236 = dma.done.wait [#allocation6], 2816  }
   0xb   :  { %237 = vsyncadd [#allocation6], 4294964480  ;;  %v45_v0 = vld [vmem:[#allocation5 + $0x18] sm:$0xff]  ;;  %v44_v1 = vld [vmem:[#allocation5 + $0x10] sm:$0xff]  ;;  %vm66_vm0 = vcmask 261120   ;;  %v112_v25 = vlaneseq  ;;  %s244_s0 = smov [#allocation7]  }
   0xc   :  { %82 = vmatpush.msra.mxu0 %v45_v0  ;;  %v62_v2 = vld [vmem:[#allocation5 + $0xa0] sm:$0xff]  ;;  %v43_v3 = vld [vmem:[#allocation5 + $0x8] sm:$0xff]  ;;  %v61_v4 = vld [vmem:[#allocation5 + $0x98] sm:$0xff]  ;;  %s137_s1 = sshll.u32 %s244_s0, 4  ;;  %s139_s23 = sshll.u32 %s271_s2, 4  ;;  %s138_s1 = int_to_ptr.vmem [resolvable:$true] %s137_s1  ;;  %s140_s23 = int_to_ptr.hbm [resolvable:$true] %s139_s23 }
   0xd   :  { %92 = vmatpush.msra.mxu1 %v62_v2  ;;  %v60_v5 = vld [vmem:[#allocation5 + $0x90] sm:$0xff]  ;;  %v42_v6 = vld [vmem:[#allocation5] sm:$0xff]  ;;  %v64_v7 = vld [vmem:[#allocation2] sm:$0xff]  ;;  %v113_v26 = vand.u32 127, %v112_v25 }
   0xe   :  { %83 = vmatpush.msra.mxu0 %v44_v1  ;;  %v59_v8 = vld [vmem:[#allocation5 + $0x88] sm:$0xff]  ;;  %v58_v9 = vld [vmem:[#allocation5 + $0x80] sm:$0xff]  ;;  %v57_v10 = vld [vmem:[#allocation5 + $0x78] sm:$0xff] }
   0xf   :  { %93 = vmatpush.msra.mxu1 %v61_v4  ;;  %v56_v11 = vld [vmem:[#allocation5 + $0x70] sm:$0xff]  ;;  %v55_v12 = vld [vmem:[#allocation5 + $0x68] sm:$0xff]  ;;  %v54_v13 = vld [vmem:[#allocation5 + $0x60] sm:$0xff]  ;;  %vm114_vm1 = vcmp.lt.s32.totalorder %v113_v26, 8  ;;  %vm129_vm2 = vcmp.eq.s32.totalorder %v113_v26, 8 }
  0x10   :  { %84 = vmatpush.msra.mxu0 %v43_v3  ;;  %v53_v14 = vld [vmem:[#allocation5 + $0x58] sm:$0xff]  ;;  %v52_v15 = vld [vmem:[#allocation5 + $0x50] sm:$0xff]  ;;  %v51_v16 = vld [vmem:[#allocation5 + $0x48] sm:$0xff] }
  0x11   :  { %94 = vmatpush.msra.mxu1 %v60_v5  ;;  %v50_v17 = vld [vmem:[#allocation5 + $0x40] sm:$0xff]  ;;  %v49_v18 = vld [vmem:[#allocation5 + $0x38] sm:$0xff]  ;;  %v48_v19 = vld [vmem:[#allocation5 + $0x30] sm:$0xff] }
  0x12   :  { %85 = vmatpush.msra.mxu0 %v42_v6  ;;  %v47_v20 = vld [vmem:[#allocation5 + $0x28] sm:$0xff]  ;;  %v156_v21 = vld [vmem:[#allocation5 + $0x20] ss:$0 sm:$0xff] }
  0x13   :  { %150 = vmatmul.msk.f32.vlgmr.msra.gmra.mxu0 %vm66_vm0, %v64_v7  ;;  %95 = vmatpush.msra.mxu1 %v59_v8  ;;  %v157_v27 = vld [vmem:[#allocation5 + $0xa8] ss:$0 sm:$0xff] }
  0x15   :  { %96 = vmatpush.msra.mxu1 %v58_v9 }
  0x17   :  { %97 = vmatpush.msra.mxu1 %v57_v10 }
  0x19   :  { %98 = vmatpush.msra.mxu1 %v56_v11 }
  0x1b   :  { %99 = vmatpush.msra.mxu1 %v55_v12 }
  0x1d   :  { %100 = vmatpush.msra.mxu1 %v54_v13 }
  0x1f   :  { %101 = vmatpush.msra.mxu1 %v53_v14 }
  0x21   :  { %102 = vmatpush.msra.mxu1 %v52_v15 }
  0x23   :  { %103 = vmatpush.msra.mxu1 %v51_v16 }
  0x25   :  { %104 = vmatpush.msra.mxu1 %v50_v17 }
  0x27   :  { %105 = vmatpush.msra.mxu1 %v49_v18 }
  0x29   :  { %106 = vmatpush.msra.mxu1 %v48_v19 }
  0x2b   :  { %107 = vmatpush.msra.mxu1 %v47_v20 }
  0x90   :  { %v87_v22 = vpop.f32.mrf.mxu0 }
  0x91   :  { %v88_v23 = vadd.f32 %v156_v21, %v87_v22 }
  0x93   :  { %v90_v24 = vmax.f32 %v88_v23, 0.0 }
  0x95   :  { %108 = vmatmul.f32.vlgmr.msra.gmra.mxu1 %v90_v24 }
 0x112   :  { %v109_v28 = vpop.f32.mrf.mxu1 }
 0x113   :  { %v110_v29 = vadd.f32 %v157_v27, %v109_v28 }
 0x115   :  { %v115_v30 = vsel %vm114_vm1, %v110_v29, -1e+30 }
 0x116   :  { %116 = vmax.xlane.f32.xlu0 %v115_v30 }
 0x189   :  { %v117_v31 = vpop.xlane.xlu0 %116 }
 0x18a   :  { %v118_v32 = vsub.f32 %v115_v30, %v117_v31 }
 0x18c   :  { %v119_v33 = vmul.f32 1.442695, %v118_v32 }
 0x18e   :  { %158 = vpow2.f32 %v119_v33 }
 0x194   :  { %v159_v34 = vpop.eup %158 }
 0x195   :  { %v121_v35 = vsel %vm114_vm1, %v159_v34, 0.0 }
 0x196   :  { %122 = vadd.xlane.f32.xlu0 %v121_v35 }
 0x209   :  { %v123_v36 = vpop.xlane.xlu0 %122 }
 0x20a   :  { %160 = vrcp.f32 %v123_v36 }
 0x210   :  { %v161_v37 = vpop.eup %160 }
 0x211   :  { %v125_v38 = vmul.f32 %v161_v37, %v123_v36 }
 0x213   :  { %v126_v39 = vsub.f32 2.0, %v125_v38 }
 0x215   :  { %v127_v40 = vmul.f32 %v161_v37, %v126_v39 }
 0x217   :  { %v128_v41 = vmul.f32 %v127_v40, %v121_v35 }
 0x219   :  { %v130_v42 = vsel %vm129_vm2, %v110_v29, %v128_v41 }
 0x21a   :  { %131 = vst [vmem:[#allocation7] sm:$0xff] %v130_v42 }
 0x21b   :  { %142 = dma.vmem_to_hbm [thread:$0]  %s138_s1, 128, %s140_s23, [#allocation4]  }
 0x21c   :  { %238 = dma.done.wait [#allocation4], 128  }
 0x21d   :  { %239 = vsyncadd [#allocation4], 4294967168 }
 0x21e   :  { %147 = vsyncpa [#allocation3], 1 }
 0x21f   :  { %148 = vsyncpa [#allocation6], 1 }
 0x220   :  { %149 = vsyncpa [#allocation4], 1 }

</bundles_post_ra>
